<compile_context>
chip_gen: v6e
topology: v6e:2x2x1
jax: 0.10.0
libtpu: 0.0.40
codegen_flags: <defaults>
</compile_context>

<pallas_src>
import functools

import jax
import jax.numpy as jnp
from jax import lax
from jax.experimental import pallas as pl
from jax.experimental.pallas import tpu as pltpu


def _mha_kernel(valid_ref,                       # SMEM (B,) int32  (scalar-prefetched)
                q_ref, k_ref, v_ref,             # VMEM (Bb,Tq,Dq)/(Bb,Tk,Dk)/(Bb,Tk,Dv) f32
                wq_ref, wk_ref, wv_ref, wo_ref,  # VMEM weights, bf16
                o_ref,                           # VMEM (Bb*Tq, H) f32
                *, num_heads):
    nh = num_heads
    Bb, Tq, Dq = q_ref.shape
    _, Tk, Dk = k_ref.shape
    Dv = v_ref.shape[2]
    H = wq_ref.shape[1]
    hd = H // nh
    G = nh * Bb                                   # (head, batch) groups, head-major
    scale = 1.0 / float(hd) ** 0.5

    f32, bf16 = jnp.float32, jnp.bfloat16
    b0 = pl.program_id(0) * Bb                    # first batch element of this block

    # ---- Input projections: one (Bb*T, D) x (D, H) bf16 matmul each (MXU, f32 acc).
    q2 = q_ref[...].reshape(Bb * Tq, Dq).astype(bf16)
    k2 = k_ref[...].reshape(Bb * Tk, Dk).astype(bf16)
    v2 = v_ref[...].reshape(Bb * Tk, Dv).astype(bf16)

    Q = jnp.dot(q2, wq_ref[...], preferred_element_type=f32)    # (Bb*Tq, H) f32
    K = jnp.dot(k2, wk_ref[...], preferred_element_type=f32)    # (Bb*Tk, H) f32
    V = jnp.dot(v2, wv_ref[...], preferred_element_type=f32)    # (Bb*Tk, H) f32

    # Fold 1/sqrt(hd) into Q (smaller than scaling the (Tq,Tk) scores).
    Q = Q * scale

    # ---- Split heads once: (Bb*T, H) -> (nh*Bb, T, hd), group g = h*Bb + b.
    def split_heads(X, T):
        heads = [X[:, h * hd:(h + 1) * hd].reshape(Bb, T, hd) for h in range(nh)]
        return jnp.stack(heads, axis=0).reshape(G, T, hd)

    Qg = split_heads(Q, Tq).astype(bf16)
    Kg = split_heads(K, Tk).astype(bf16)
    Vg = split_heads(V, Tk).astype(bf16)

    # ---- All heads' scores in one batched contraction (f32 accumulation).
    scores = jnp.einsum('gqe,gke->gqk', Qg, Kg,
                        preferred_element_type=f32)              # (G, Tq, Tk) f32

    # ---- Masked softmax (all f32). Mask built from small (G,1,Tk) tensors; the
    #      final select broadcasts the condition along the Tq sublane axis.
    col = lax.broadcasted_iota(jnp.int32, (G, 1, Tk), 2)
    if Bb == 1:
        vl = jnp.full((G, 1, Tk), valid_ref[b0], jnp.int32)
    else:
        grp = lax.broadcasted_iota(jnp.int32, (G, 1, Tk), 0)
        b_of_g = grp % Bb                                        # batch element of group g
        vl = jnp.zeros((G, 1, Tk), jnp.int32)
        for i in range(Bb):                                      # static, on tiny tensors
            vl = jnp.where(b_of_g == i, valid_ref[b0 + i], vl)
    scores = jnp.where(col < vl, scores, -1e6)                   # d2l masked_softmax

    m = jnp.max(scores, axis=-1, keepdims=True)
    e = jnp.exp(scores - m)
    s = jnp.sum(e, axis=-1, keepdims=True)
    attn = e * pl.reciprocal(s, approx=True)                     # EUP divide, f32

    # ---- attention * V, all heads batched.
    ctx = jnp.einsum('gqk,gke->gqe', attn.astype(bf16), Vg,
                     preferred_element_type=f32)                 # (G, Tq, hd) f32

    # ---- Output projection: put heads back on the lane axis (fits one vreg at
    #      H=32) and do a single (Bb*Tq, H) x (H, H) matmul.
    ctx_cat = jnp.concatenate(
        [ctx[h * Bb:(h + 1) * Bb].reshape(Bb * Tq, hd) for h in range(nh)],
        axis=-1)                                                 # (Bb*Tq, H)
    out = jnp.dot(ctx_cat.astype(bf16), wo_ref[...],
                  preferred_element_type=f32)                    # (Bb*Tq, H) f32

    o_ref[...] = out.astype(o_ref.dtype)


def _pick_block_b(B, Tq, Tk, num_heads):
    """Default batch-block size.

    Keep grid length >= 2 (both v7x TensorCores busy + pipeline overlap across
    steps on all generations); within that, grow the block until each projection
    matmul sees >= 256 rows (v6e/v7x MXU height) or the live f32 (G,Tq,Tk) scores
    would exceed a conservative VMEM budget (v7x only has 64 MiB physical VMEM).
    """
    scores_budget = 8 << 20      # bytes, ~3 live copies of the f32 scores
    best = 1
    for d in range(1, max(1, B // 2) + 1):
        if B % d != 0:
            continue
        if 3 * num_heads * d * Tq * Tk * 4 > scores_budget:
            break
        best = d
        if d * Tq >= 256:
            break
    return best


def multi_head_attention(queries, keys, values, valid_lens,
                         w_q, w_k, w_v, w_o, num_heads, block_b=None):
    B, Tq, Dq = queries.shape
    _, Tk, Dk = keys.shape
    Dv = values.shape[2]
    H = w_q.shape[1]

    if block_b is None:
        block_b = _pick_block_b(B, Tq, Tk, num_heads)
    assert B % block_b == 0
    # Output block rows must be a multiple of 8 (or the full extent).
    if (block_b * Tq) % 8 != 0 and block_b != B:
        block_b = B
    grid = (B // block_b,)

    # Weights streamed as bf16 (pure MXU operands); activations stay f32 and are
    # cast in-kernel right before the MXU, accumulation is f32 everywhere.
    bf16 = jnp.bfloat16
    w_q = w_q.astype(bf16)
    w_k = w_k.astype(bf16)
    w_v = w_v.astype(bf16)
    w_o = w_o.astype(bf16)

    kernel = functools.partial(_mha_kernel, num_heads=num_heads)

    # Note: the four weight inputs are grid-invariant; with larger H it is worth
    # single-buffering them via pipeline_mode=pl.Buffered(1) (negligible at 32x32).
    grid_spec = pltpu.PrefetchScalarGridSpec(
        num_scalar_prefetch=1,
        grid=grid,
        in_specs=[
            pl.BlockSpec((block_b, Tq, Dq), lambda i, vl: (i, 0, 0)),
            pl.BlockSpec((block_b, Tk, Dk), lambda i, vl: (i, 0, 0)),
            pl.BlockSpec((block_b, Tk, Dv), lambda i, vl: (i, 0, 0)),
            pl.BlockSpec((Dq, H), lambda i, vl: (0, 0)),
            pl.BlockSpec((Dk, H), lambda i, vl: (0, 0)),
            pl.BlockSpec((Dv, H), lambda i, vl: (0, 0)),
            pl.BlockSpec((H, H), lambda i, vl: (0, 0)),
        ],
        # 2-D output slab (B*Tq, H); row-major identical to (B, Tq, H).
        out_specs=pl.BlockSpec((block_b * Tq, H), lambda i, vl: (i, 0)),
    )

    out2d = pl.pallas_call(
        kernel,
        out_shape=jax.ShapeDtypeStruct((B * Tq, H), jnp.float32),
        grid_spec=grid_spec,
        compiler_params=pltpu.CompilerParams(
            dimension_semantics=("parallel",)),
    )(valid_lens, queries, keys, values, w_q, w_k, w_v, w_o)

    return out2d.reshape(B, Tq, H)


def _reference(queries, keys, values, valid_lens, w_q, w_k, w_v, w_o, num_heads):
    """Pure-JAX f32 reference mirroring the PyTorch module (dropout=0, eval)."""
    B, Tq, _ = queries.shape
    Tk = keys.shape[1]
    H = w_q.shape[1]
    hd = H // num_heads

    def split(x):  # transpose_qkv
        x = x.reshape(x.shape[0], x.shape[1], num_heads, hd)
        x = jnp.transpose(x, (0, 2, 1, 3))
        return x.reshape(-1, x.shape[2], x.shape[3])

    Q = split(queries @ w_q)
    K = split(keys @ w_k)
    V = split(values @ w_v)
    vl = jnp.repeat(valid_lens, num_heads, axis=0)              # (B*nh,)

    scores = jnp.einsum("bqd,bkd->bqk", Q, K) / (hd ** 0.5)
    col = jnp.arange(Tk)[None, None, :]
    scores = jnp.where(col < vl[:, None, None], scores, -1e6)
    attn = jax.nn.softmax(scores, axis=-1)
    out = jnp.einsum("bqk,bkd->bqd", attn, V)                   # (B*nh, Tq, hd)

    out = out.reshape(-1, num_heads, Tq, hd)                    # transpose_output
    out = jnp.transpose(out, (0, 2, 1, 3)).reshape(B, Tq, H)
    return out @ w_o


if __name__ == "__main__":
    B, Tq, Tk = 2, 8, 8
    key_size = query_size = value_size = 32
    num_hiddens = 32
    num_heads = 4

    root = jax.random.PRNGKey(0)
    kq, kk, kv, kwq, kwk, kwv, kwo = jax.random.split(root, 7)

    queries = jax.random.normal(kq, (B, Tq, query_size), jnp.float32)
    keys = jax.random.normal(kk, (B, Tk, key_size), jnp.float32)
    values = jax.random.normal(kv, (B, Tk, value_size), jnp.float32)
    valid_lens = jnp.array([3, 8], dtype=jnp.int32)

    def init_w(k, fan_in, fan_out):
        bound = 1.0 / (fan_in ** 0.5)
        return jax.random.uniform(k, (fan_in, fan_out), jnp.float32,
                                  minval=-bound, maxval=bound)

    w_q = init_w(kwq, query_size, num_hiddens)
    w_k = init_w(kwk, key_size, num_hiddens)
    w_v = init_w(kwv, value_size, num_hiddens)
    w_o = init_w(kwo, num_hiddens, num_hiddens)

    out = multi_head_attention(queries, keys, values, valid_lens,
                               w_q, w_k, w_v, w_o, num_heads)
    out = jax.block_until_ready(out)

    ref = _reference(queries, keys, values, valid_lens,
                     w_q, w_k, w_v, w_o, num_heads)
    assert out.shape == (B, Tq, num_hiddens)
    # bf16 MXU operands + approx reciprocal => compare against the f32 reference
    # with a mixed-precision tolerance.
    assert jnp.allclose(out, ref, atol=5e-2, rtol=5e-2), \
        f"max abs err {float(jnp.max(jnp.abs(out - ref)))}"

    print("KERNEL_OK")
</pallas_src>

<mosaic_0001>
module attributes {stable_mosaic.version = 11 : i64} {
  func.func @_mha_kernel(%arg0: i32, %arg1: memref<2xi32, #tpu.memory_space<smem>>, %arg2: memref<1x8x32xf32, #tpu.memory_space<vmem>>, %arg3: memref<1x8x32xf32, #tpu.memory_space<vmem>>, %arg4: memref<1x8x32xf32, #tpu.memory_space<vmem>>, %arg5: memref<32x32xbf16, #tpu.memory_space<vmem>>, %arg6: memref<32x32xbf16, #tpu.memory_space<vmem>>, %arg7: memref<32x32xbf16, #tpu.memory_space<vmem>>, %arg8: memref<32x32xbf16, #tpu.memory_space<vmem>>, %arg9: memref<8x32xf32, #tpu.memory_space<vmem>>) attributes {dimension_semantics = [#tpu.dimension_semantics<parallel>], iteration_bounds = array<i64: 2>, scalar_prefetch = 1 : i64, scratch_operands = 0 : i64, tpu.core_type = #tpu.core_type<tc>, window_params = [{transform_indices = @transform_0, window_bounds = array<i64: 1, 8, 32>}, {transform_indices = @transform_1, window_bounds = array<i64: 1, 8, 32>}, {transform_indices = @transform_2, window_bounds = array<i64: 1, 8, 32>}, {pipeline_mode = #tpu.pipeline_mode<synchronous>, transform_indices = @transform_3, window_bounds = array<i64: 32, 32>}, {pipeline_mode = #tpu.pipeline_mode<synchronous>, transform_indices = @transform_4, window_bounds = array<i64: 32, 32>}, {pipeline_mode = #tpu.pipeline_mode<synchronous>, transform_indices = @transform_5, window_bounds = array<i64: 32, 32>}, {pipeline_mode = #tpu.pipeline_mode<synchronous>, transform_indices = @transform_6, window_bounds = array<i64: 32, 32>}, {transform_indices = @transform_7, window_bounds = array<i64: 8, 32>}]} {
    %c1_i32 = arith.constant 1 : i32
    %0 = arith.muli %arg0, %c1_i32 : i32
    %c0 = arith.constant 0 : index
    %c0_0 = arith.constant 0 : index
    %c0_1 = arith.constant 0 : index
    %1 = vector.load %arg2[%c0, %c0_0, %c0_1] : memref<1x8x32xf32, #tpu.memory_space<vmem>>, vector<1x8x32xf32>
    %2 = vector.shape_cast %1 : vector<1x8x32xf32> to vector<8x32xf32>
    %3 = arith.truncf %2 : vector<8x32xf32> to vector<8x32xbf16>
    %c0_2 = arith.constant 0 : index
    %c0_3 = arith.constant 0 : index
    %c0_4 = arith.constant 0 : index
    %4 = vector.load %arg3[%c0_2, %c0_3, %c0_4] : memref<1x8x32xf32, #tpu.memory_space<vmem>>, vector<1x8x32xf32>
    %5 = vector.shape_cast %4 : vector<1x8x32xf32> to vector<8x32xf32>
    %6 = arith.truncf %5 : vector<8x32xf32> to vector<8x32xbf16>
    %c0_5 = arith.constant 0 : index
    %c0_6 = arith.constant 0 : index
    %c0_7 = arith.constant 0 : index
    %7 = vector.load %arg4[%c0_5, %c0_6, %c0_7] : memref<1x8x32xf32, #tpu.memory_space<vmem>>, vector<1x8x32xf32>
    %8 = vector.shape_cast %7 : vector<1x8x32xf32> to vector<8x32xf32>
    %9 = arith.truncf %8 : vector<8x32xf32> to vector<8x32xbf16>
    %c0_8 = arith.constant 0 : index
    %c0_9 = arith.constant 0 : index
    %10 = vector.load %arg5[%c0_8, %c0_9] : memref<32x32xbf16, #tpu.memory_space<vmem>>, vector<32x32xbf16>
    %cst = arith.constant dense<0.000000e+00> : vector<8x32xf32>
    %11 = tpu.matmul %3, %10, %cst {dimension_numbers = #tpu.dot_dimension_numbers<[1], [0], [0], [1], [0, 0, 1, 1], [], []>} : vector<8x32xbf16>, vector<32x32xbf16>, vector<8x32xf32> -> vector<8x32xf32>
    %c0_10 = arith.constant 0 : index
    %c0_11 = arith.constant 0 : index
    %12 = vector.load %arg6[%c0_10, %c0_11] : memref<32x32xbf16, #tpu.memory_space<vmem>>, vector<32x32xbf16>
    %cst_12 = arith.constant dense<0.000000e+00> : vector<8x32xf32>
    %13 = tpu.matmul %6, %12, %cst_12 {dimension_numbers = #tpu.dot_dimension_numbers<[1], [0], [0], [1], [0, 0, 1, 1], [], []>} : vector<8x32xbf16>, vector<32x32xbf16>, vector<8x32xf32> -> vector<8x32xf32>
    %c0_13 = arith.constant 0 : index
    %c0_14 = arith.constant 0 : index
    %14 = vector.load %arg7[%c0_13, %c0_14] : memref<32x32xbf16, #tpu.memory_space<vmem>>, vector<32x32xbf16>
    %cst_15 = arith.constant dense<0.000000e+00> : vector<8x32xf32>
    %15 = tpu.matmul %9, %14, %cst_15 {dimension_numbers = #tpu.dot_dimension_numbers<[1], [0], [0], [1], [0, 0, 1, 1], [], []>} : vector<8x32xbf16>, vector<32x32xbf16>, vector<8x32xf32> -> vector<8x32xf32>
    %cst_16 = arith.constant 0.353553385 : f32
    %16 = vector.broadcast %cst_16 : f32 to vector<8x32xf32>
    %17 = arith.mulf %11, %16 : vector<8x32xf32>
    %18 = vector.extract_strided_slice %17 {offsets = [0, 0], sizes = [8, 8], strides = [1, 1]} : vector<8x32xf32> to vector<8x8xf32>
    %19 = vector.shape_cast %18 : vector<8x8xf32> to vector<1x8x8xf32>
    %20 = vector.extract_strided_slice %17 {offsets = [0, 8], sizes = [8, 8], strides = [1, 1]} : vector<8x32xf32> to vector<8x8xf32>
    %21 = vector.shape_cast %20 : vector<8x8xf32> to vector<1x8x8xf32>
    %22 = vector.extract_strided_slice %17 {offsets = [0, 16], sizes = [8, 8], strides = [1, 1]} : vector<8x32xf32> to vector<8x8xf32>
    %23 = vector.shape_cast %22 : vector<8x8xf32> to vector<1x8x8xf32>
    %24 = vector.extract_strided_slice %17 {offsets = [0, 24], sizes = [8, 8], strides = [1, 1]} : vector<8x32xf32> to vector<8x8xf32>
    %25 = vector.shape_cast %24 : vector<8x8xf32> to vector<1x8x8xf32>
    %26 = vector.shape_cast %19 : vector<1x8x8xf32> to vector<1x1x8x8xf32>
    %27 = vector.shape_cast %21 : vector<1x8x8xf32> to vector<1x1x8x8xf32>
    %28 = vector.shape_cast %23 : vector<1x8x8xf32> to vector<1x1x8x8xf32>
    %29 = vector.shape_cast %25 : vector<1x8x8xf32> to vector<1x1x8x8xf32>
    %30 = tpu.concatenate %26, %27, %28, %29 in 0 : vector<1x1x8x8xf32>, vector<1x1x8x8xf32>, vector<1x1x8x8xf32>, vector<1x1x8x8xf32> -> vector<4x1x8x8xf32>
    %31 = vector.shape_cast %30 : vector<4x1x8x8xf32> to vector<4x8x8xf32>
    %32 = arith.truncf %31 : vector<4x8x8xf32> to vector<4x8x8xbf16>
    %33 = vector.extract_strided_slice %13 {offsets = [0, 0], sizes = [8, 8], strides = [1, 1]} : vector<8x32xf32> to vector<8x8xf32>
    %34 = vector.shape_cast %33 : vector<8x8xf32> to vector<1x8x8xf32>
    %35 = vector.extract_strided_slice %13 {offsets = [0, 8], sizes = [8, 8], strides = [1, 1]} : vector<8x32xf32> to vector<8x8xf32>
    %36 = vector.shape_cast %35 : vector<8x8xf32> to vector<1x8x8xf32>
    %37 = vector.extract_strided_slice %13 {offsets = [0, 16], sizes = [8, 8], strides = [1, 1]} : vector<8x32xf32> to vector<8x8xf32>
    %38 = vector.shape_cast %37 : vector<8x8xf32> to vector<1x8x8xf32>
    %39 = vector.extract_strided_slice %13 {offsets = [0, 24], sizes = [8, 8], strides = [1, 1]} : vector<8x32xf32> to vector<8x8xf32>
    %40 = vector.shape_cast %39 : vector<8x8xf32> to vector<1x8x8xf32>
    %41 = vector.shape_cast %34 : vector<1x8x8xf32> to vector<1x1x8x8xf32>
    %42 = vector.shape_cast %36 : vector<1x8x8xf32> to vector<1x1x8x8xf32>
    %43 = vector.shape_cast %38 : vector<1x8x8xf32> to vector<1x1x8x8xf32>
    %44 = vector.shape_cast %40 : vector<1x8x8xf32> to vector<1x1x8x8xf32>
    %45 = tpu.concatenate %41, %42, %43, %44 in 0 : vector<1x1x8x8xf32>, vector<1x1x8x8xf32>, vector<1x1x8x8xf32>, vector<1x1x8x8xf32> -> vector<4x1x8x8xf32>
    %46 = vector.shape_cast %45 : vector<4x1x8x8xf32> to vector<4x8x8xf32>
    %47 = arith.truncf %46 : vector<4x8x8xf32> to vector<4x8x8xbf16>
    %48 = vector.extract_strided_slice %15 {offsets = [0, 0], sizes = [8, 8], strides = [1, 1]} : vector<8x32xf32> to vector<8x8xf32>
    %49 = vector.shape_cast %48 : vector<8x8xf32> to vector<1x8x8xf32>
    %50 = vector.extract_strided_slice %15 {offsets = [0, 8], sizes = [8, 8], strides = [1, 1]} : vector<8x32xf32> to vector<8x8xf32>
    %51 = vector.shape_cast %50 : vector<8x8xf32> to vector<1x8x8xf32>
    %52 = vector.extract_strided_slice %15 {offsets = [0, 16], sizes = [8, 8], strides = [1, 1]} : vector<8x32xf32> to vector<8x8xf32>
    %53 = vector.shape_cast %52 : vector<8x8xf32> to vector<1x8x8xf32>
    %54 = vector.extract_strided_slice %15 {offsets = [0, 24], sizes = [8, 8], strides = [1, 1]} : vector<8x32xf32> to vector<8x8xf32>
    %55 = vector.shape_cast %54 : vector<8x8xf32> to vector<1x8x8xf32>
    %56 = vector.shape_cast %49 : vector<1x8x8xf32> to vector<1x1x8x8xf32>
    %57 = vector.shape_cast %51 : vector<1x8x8xf32> to vector<1x1x8x8xf32>
    %58 = vector.shape_cast %53 : vector<1x8x8xf32> to vector<1x1x8x8xf32>
    %59 = vector.shape_cast %55 : vector<1x8x8xf32> to vector<1x1x8x8xf32>
    %60 = tpu.concatenate %56, %57, %58, %59 in 0 : vector<1x1x8x8xf32>, vector<1x1x8x8xf32>, vector<1x1x8x8xf32>, vector<1x1x8x8xf32> -> vector<4x1x8x8xf32>
    %61 = vector.shape_cast %60 : vector<4x1x8x8xf32> to vector<4x8x8xf32>
    %62 = arith.truncf %61 : vector<4x8x8xf32> to vector<4x8x8xbf16>
    "tpu.trace_start"() <{level = 10 : i32, message = "gqe,gke->gqk"}> : () -> ()
    %cst_17 = arith.constant dense<0.000000e+00> : vector<4x8x8xf32>
    %63 = tpu.matmul %32, %47, %cst_17 {dimension_numbers = #tpu.dot_dimension_numbers<[2], [2], [1], [1], [0, 0, 0, 1, 1, 1], [0], [0]>} : vector<4x8x8xbf16>, vector<4x8x8xbf16>, vector<4x8x8xf32> -> vector<4x8x8xf32>
    "tpu.trace_stop"() : () -> ()
    %64 = tpu.iota {dimensions = array<i32: 2>} : vector<4x1x8xi32>
    %65 = arith.index_cast %0 : i32 to index
    %66 = memref.load %arg1[%65] : memref<2xi32, #tpu.memory_space<smem>>
    %67 = vector.broadcast %66 : i32 to vector<4x1x8xi32>
    %68 = arith.cmpi slt, %64, %67 : vector<4x1x8xi32>
    %cst_18 = arith.constant -1.000000e+06 : f32
    %69 = vector.shape_cast %68 : vector<4x1x8xi1> to vector<4x1x8xi1>
    %70 = vector.broadcast %69 : vector<4x1x8xi1> to vector<4x8x8xi1>
    %71 = vector.broadcast %cst_18 : f32 to vector<4x8x8xf32>
    %72 = arith.select %70, %63, %71 : vector<4x8x8xi1>, vector<4x8x8xf32>
    %cst_19 = arith.constant dense<0xFF800000> : vector<4x8xf32>
    %73 = vector.multi_reduction <maximumf>, %72, %cst_19 [2] : vector<4x8x8xf32> to vector<4x8xf32>
    %74 = vector.shape_cast %73 : vector<4x8xf32> to vector<4x8x1xf32>
    %75 = vector.broadcast %74 : vector<4x8x1xf32> to vector<4x8x8xf32>
    %76 = arith.subf %72, %75 : vector<4x8x8xf32>
    %77 = math.exp %76 : vector<4x8x8xf32>
    %cst_20 = arith.constant dense<0.000000e+00> : vector<4x8xf32>
    %78 = vector.multi_reduction <add>, %77, %cst_20 [2] : vector<4x8x8xf32> to vector<4x8xf32>
    %79 = vector.shape_cast %78 : vector<4x8xf32> to vector<4x8x1xf32>
    %80 = tpu.reciprocal %79 {approx = true} : vector<4x8x1xf32> -> vector<4x8x1xf32>
    %81 = vector.broadcast %80 : vector<4x8x1xf32> to vector<4x8x8xf32>
    %82 = arith.mulf %77, %81 : vector<4x8x8xf32>
    %83 = arith.truncf %82 : vector<4x8x8xf32> to vector<4x8x8xbf16>
    "tpu.trace_start"() <{level = 10 : i32, message = "gqk,gke->gqe"}> : () -> ()
    %cst_21 = arith.constant dense<0.000000e+00> : vector<4x8x8xf32>
    %84 = tpu.matmul %83, %62, %cst_21 {dimension_numbers = #tpu.dot_dimension_numbers<[2], [1], [1], [2], [0, 0, 0, 1, 1, 2], [0], [0]>} : vector<4x8x8xbf16>, vector<4x8x8xbf16>, vector<4x8x8xf32> -> vector<4x8x8xf32>
    "tpu.trace_stop"() : () -> ()
    %85 = vector.extract_strided_slice %84 {offsets = [0, 0, 0], sizes = [1, 8, 8], strides = [1, 1, 1]} : vector<4x8x8xf32> to vector<1x8x8xf32>
    %86 = vector.shape_cast %85 : vector<1x8x8xf32> to vector<8x8xf32>
    %87 = vector.extract_strided_slice %84 {offsets = [1, 0, 0], sizes = [1, 8, 8], strides = [1, 1, 1]} : vector<4x8x8xf32> to vector<1x8x8xf32>
    %88 = vector.shape_cast %87 : vector<1x8x8xf32> to vector<8x8xf32>
    %89 = vector.extract_strided_slice %84 {offsets = [2, 0, 0], sizes = [1, 8, 8], strides = [1, 1, 1]} : vector<4x8x8xf32> to vector<1x8x8xf32>
    %90 = vector.shape_cast %89 : vector<1x8x8xf32> to vector<8x8xf32>
    %91 = vector.extract_strided_slice %84 {offsets = [3, 0, 0], sizes = [1, 8, 8], strides = [1, 1, 1]} : vector<4x8x8xf32> to vector<1x8x8xf32>
    %92 = vector.shape_cast %91 : vector<1x8x8xf32> to vector<8x8xf32>
    %93 = tpu.concatenate %86, %88, %90, %92 in 1 : vector<8x8xf32>, vector<8x8xf32>, vector<8x8xf32>, vector<8x8xf32> -> vector<8x32xf32>
    %94 = arith.truncf %93 : vector<8x32xf32> to vector<8x32xbf16>
    %c0_22 = arith.constant 0 : index
    %c0_23 = arith.constant 0 : index
    %95 = vector.load %arg8[%c0_22, %c0_23] : memref<32x32xbf16, #tpu.memory_space<vmem>>, vector<32x32xbf16>
    %cst_24 = arith.constant dense<0.000000e+00> : vector<8x32xf32>
    %96 = tpu.matmul %94, %95, %cst_24 {dimension_numbers = #tpu.dot_dimension_numbers<[1], [0], [0], [1], [0, 0, 1, 1], [], []>} : vector<8x32xbf16>, vector<32x32xbf16>, vector<8x32xf32> -> vector<8x32xf32>
    %c0_25 = arith.constant 0 : index
    %c0_26 = arith.constant 0 : index
    %97 = vector.load %arg9[%c0_25, %c0_26] : memref<8x32xf32, #tpu.memory_space<vmem>>, vector<8x32xf32>
    tpu.vector_store %arg9[%c0_25, %c0_26], %96 {strides = array<i32>} : memref<8x32xf32, #tpu.memory_space<vmem>>, vector<8x32xf32>,
    return
  }
  func.func @transform_0(%arg0: i32, %arg1: memref<2xi32, #tpu.memory_space<smem>>) -> (i32, i32, i32) {
    %c0_i32 = arith.constant 0 : i32
    %c0_i32_0 = arith.constant 0 : i32
    %c0_i32_1 = arith.constant 0 : i32
    return %arg0, %c0_i32, %c0_i32_0 : i32, i32, i32
  }
  func.func @transform_1(%arg0: i32, %arg1: memref<2xi32, #tpu.memory_space<smem>>) -> (i32, i32, i32) {
    %c0_i32 = arith.constant 0 : i32
    %c0_i32_0 = arith.constant 0 : i32
    %c0_i32_1 = arith.constant 0 : i32
    return %arg0, %c0_i32, %c0_i32_0 : i32, i32, i32
  }
  func.func @transform_2(%arg0: i32, %arg1: memref<2xi32, #tpu.memory_space<smem>>) -> (i32, i32, i32) {
    %c0_i32 = arith.constant 0 : i32
    %c0_i32_0 = arith.constant 0 : i32
    %c0_i32_1 = arith.constant 0 : i32
    return %arg0, %c0_i32, %c0_i32_0 : i32, i32, i32
  }
  func.func @transform_3(%arg0: i32, %arg1: memref<2xi32, #tpu.memory_space<smem>>) -> (i32, i32) {
    %c0_i32 = arith.constant 0 : i32
    %c0_i32_0 = arith.constant 0 : i32
    %c0_i32_1 = arith.constant 0 : i32
    return %c0_i32, %c0_i32_0 : i32, i32
  }
  func.func @transform_4(%arg0: i32, %arg1: memref<2xi32, #tpu.memory_space<smem>>) -> (i32, i32) {
    %c0_i32 = arith.constant 0 : i32
    %c0_i32_0 = arith.constant 0 : i32
    %c0_i32_1 = arith.constant 0 : i32
    return %c0_i32, %c0_i32_0 : i32, i32
  }
  func.func @transform_5(%arg0: i32, %arg1: memref<2xi32, #tpu.memory_space<smem>>) -> (i32, i32) {
    %c0_i32 = arith.constant 0 : i32
    %c0_i32_0 = arith.constant 0 : i32
    %c0_i32_1 = arith.constant 0 : i32
    return %c0_i32, %c0_i32_0 : i32, i32
  }
  func.func @transform_6(%arg0: i32, %arg1: memref<2xi32, #tpu.memory_space<smem>>) -> (i32, i32) {
    %c0_i32 = arith.constant 0 : i32
    %c0_i32_0 = arith.constant 0 : i32
    %c0_i32_1 = arith.constant 0 : i32
    return %c0_i32, %c0_i32_0 : i32, i32
  }
  func.func @transform_7(%arg0: i32, %arg1: memref<2xi32, #tpu.memory_space<smem>>) -> (i32, i32) {
    %c0_i32 = arith.constant 0 : i32
    %c0_i32_0 = arith.constant 0 : i32
    return %arg0, %c0_i32 : i32, i32
  }
}

</mosaic_0001>

<bundles_post_ra>
// kernel: tpu_custom_call.1
= control target key start
LH: loop header
LB: loop body
LE: loop exit
PB: predicated region body
PF: predicated region fallthrough
CT: control target
= control target key end

     0   :  { %s1890_s27 = smov [#allocation3]   ;;  %s2345_s0 = inlined_call_operand.hbm [shape: s32[2], index: 0, kind: input, shape index: {}]   ;;  %s2346_s1 = inlined_call_operand.hbm [shape: f32[2,8,32], index: 1, kind: input, shape index: {}]   ;;  %s2347_s2 = inlined_call_operand.hbm [shape: f32[2,8,32], index: 2, kind: input, shape index: {}]   ;;  %s2348_s3 = inlined_call_operand.hbm [shape: f32[2,8,32], index: 3, kind: input, shape index: {}]   ;;  %s2349_s4 = inlined_call_operand.hbm [shape: bf16[32,32], index: 4, kind: input, shape index: {}]   ;;  %s2350_s5 = inlined_call_operand.hbm [shape: bf16[32,32], index: 5, kind: input, shape index: {}]   ;;  %s2351_s6 = inlined_call_operand.hbm [shape: bf16[32,32], index: 6, kind: input, shape index: {}]   ;;  %s2352_s7 = inlined_call_operand.hbm [shape: bf16[32,32], index: 7, kind: input, shape index: {}]   ;;  %s2353_s8 = inlined_call_operand.hbm [shape: f32[16,32], index: 8, kind: output, shape index: {}]  }
   0x1   :  { %2371 = sst [smem:[#allocation26_spill]] %s2346_s1 }
   0x2   :  { %2372 = sst [smem:[#allocation27_spill]] %s2347_s2 }
   0x3   :  { %2373 = sst [smem:[#allocation28_spill]] %s2349_s4 }
   0x4   :  { %2374 = sst [smem:[#allocation29_spill]] %s2351_s6 }
   0x5   :  { %14 = dma.hbm_to_smem %s2345_s0, 16, %s1890_s27, [#allocation2] }
   0x6   :  { %1852 = dma.done.wait [#allocation2], 16 }
   0x7   :  { %1853 = vsyncadd [#allocation2], 4294967280 }
   0x8   :  { %16 = sfence }
   0x9   :  { %17 = vsyncpa [#allocation5], 0 }
   0xa   :  { %19 = vsyncpa [#allocation5 + $0x1], 0 }
   0xb   :  { %20 = vsyncpa [#allocation8], 0 }
   0xc   :  { %22 = vsyncpa [#allocation8 + $0x1], 0 }
   0xd   :  { %23 = vsyncpa [#allocation11], 0 }
   0xe   :  { %24 = vsyncpa [#allocation14], 0 }
   0xf   :  { %25 = vsyncpa [#allocation6], 0 }
  0x10   :  { %27 = vsyncpa [#allocation6 + $0x1], 0  ;;  %s1957_s30 = smov 0   ;;  %s1959_s9 = smov 0  }
  0x11   :  { %s1961_s10 = smov 0   ;;  %s1963_s11 = smov 0  }
  0x12 LB: > { %2375 = sst [smem:[#allocation23_spill]] %s1888_s11  ;;  %s1891_s0 = smov [#allocation10]   ;;  %s1888_s11 = sphi %s1963_s11, %s2408_s11   ;;  %s1884_s10 = sphi %s1961_s10, %s2412_s10   ;;  %s1880_s9 = sphi %s1959_s9, %s2411_s9   ;;  %s1876_s30 = sphi %s1957_s30, %s2410_s30  }
  0x13   : > { %s238_s12 = sshll.u32 %s1891_s0, 4  ;;  %s1978_s13 = sadd.s32 4294967295, %s1888_s11   ;;  %s239_s12 = int_to_ptr.vmem [resolvable:$true] %s238_s12 }
  0x14   : > { %p1329_p0 = scmp.ge.s32.totalorder %s1888_s11, 1  ;;  %p2363_p1 = scmp.eq.s32.totalorder %s1978_s13, 0 }
  0x15   : > { %p226_p2 = scmp.lt.s32.totalorder %s1888_s11, 3  ;;  %s1892_s15 = smov [#allocation13]  }
  0x16   : > { %s264_s16 = sshll.u32 %s1892_s15, 4  ;;  %s1633_s18 = scalar_lea.vmem %s239_s12, 256  ;;  %s265_s16 = int_to_ptr.vmem [resolvable:$true] %s264_s16 }
  0x17   : > { %p1983_p3 = pnand %p1329_p0, %p226_p2  ;;  %p1634_p8 = scmp.ne.s32.totalorder %s239_s12, %s1633_s18 }
  0x18   : > { %p1641_p11 = scmp.lt.s32.totalorder %s239_s12, %s239_s12  ;;  %p1642_p12 = scmp.lt.s32.totalorder %s1633_s18, %s1633_s18 }
  0x19   : > { %s2376_s14 = scalar_select %p1983_p3, 1, 0 }
  0x1a   : > { %p1506_p5 = pneg %p1983_p3  ;;  %p1643_p13 = por %p1642_p12, %p1641_p11 }
  0x1c   : > { %p1992_p6 = pnand %p1506_p5, %p2363_p1 }
  0x1e   : > { %s2377_s17 = scalar_select %p1992_p6, 1, 0 }
  0x1f   : > { %p2354_p7 = pneg %p1992_p6 }
  0x21   : > { %p1636_p9 = pnand %p1634_p8, %p2354_p7 }
  0x23   : > { %p1637_p10 = pneg %p1636_p9 }
  0x25   : > { %p1644_p0 = pnand %p1643_p13, %p1637_p10 }
  0x27   : > { %1647 = shalt.err (!%p1644_p0)
}
  0x28   : > { %s2356_s19 = smov 64   ;;  %s2358_s20 = smov 4  }
  0x29   : > { %s2378_s4 = sld [smem:[#allocation28_spill]]  ;;  %s1659_s23 = scalar_lea.vmem %s265_s16, 256 }
  0x2a   : > { %p1660_p2 = scmp.ne.s32.totalorder %s265_s16, %s1659_s23  ;;  %p1667_p9 = scmp.lt.s32.totalorder %s265_s16, %s265_s16 }
  0x2b   : > { %p1668_p10 = scmp.lt.s32.totalorder %s1659_s23, %s1659_s23 }
  0x2c   : > { %p1662_p5 = pnand %p1660_p2, %p2354_p7 }
  0x2d   : > { %p1669_p11 = por %p1668_p10, %p1667_p9 }
  0x2e   : > { %p1663_p8 = pneg %p1662_p5 }
  0x2f   : > { %1509 = dma.hbm_to_vmem [thread:$0]  (!%p1992_p6), %s2378_s4, 256, %s239_s12, [#allocation11], %s2356_s19, %s2356_s19, %s2358_s20  }
  0x30   : > { %p1670_p12 = pnand %p1669_p11, %p1663_p8 }
  0x32   : > { %1673 = shalt.err (!%p1670_p12)
}
  0x33   : > { %s2379_s6 = sld [smem:[#allocation29_spill]]  ;;  %s1328_s26 = sadd.s32 4294967294, %s1888_s11  }
  0x34   : > { %s2022_s27 = sadd.s32 1, %s1888_s11   ;;  %s40_s29 = sadd.s32 1, %s1884_s10 }
  0x35   : > { %2380 = sst [smem:[#allocation24_spill]] %s2022_s27  ;;  %s37_s28 = ssub.s32 %s1888_s11, %s2022_s27 }
  0x36   : > { %p38_p13 = scmp.eq.s32.totalorder %s37_s28, 0  ;;  %p47_p0 = scmp.ne.s32.totalorder %s1884_s10, %s1880_s9 }
  0x37   : > { %p48_p2 = scmp.eq.s32.totalorder %s1888_s11, 0  ;;  %p53_p5 = scmp.ne.s32.totalorder %s1880_s9, %s1876_s30 }
  0x38   : > { %s2033_s0 = scalar_select %p38_p13, %s1884_s10, %s40_s29  }
  0x39   : > { %1515 = dma.hbm_to_vmem [thread:$0]  (!%p1992_p6), %s2379_s6, 256, %s265_s16, [#allocation14], %s2356_s19, %s2356_s19, %s2358_s20  }
  0x3a   : > { %2381 = sst [smem:[#allocation25_spill]] %s2033_s0  ;;  %p49_p8 = por %p48_p2, %p47_p0 }
  0x3b   : > { %p2037_p9 = por %p2363_p1, %p53_p5  ;;  %p213_p10 = scmp.eq.s32.totalorder %s1978_s13, 1 }
  0x3c   : > { %p219_p11 = scmp.eq.s32.totalorder %s1328_s26, 1  ;;  %p1537_p12 = scmp.lt.s32.totalorder %s1888_s11, 2 }
  0x3d   : > { %s2382_s12 = scalar_select %p2037_p9, 1, 0 }
  0x3e   : > { %s2355_s15 = sand.u32 1, %s1884_s10   ;;  %p2044_p4 = por %p213_p10, %p47_p0 }
  0x3f   : > { %p2048_p7 = por %p219_p11, %p53_p5  ;;  %s2054_s21 = sshll.u32 %s2355_s15, 3 }
  0x40   : > { %s2383_s16 = scalar_select %p2044_p4, 1, 0 }
  0x41   : > { %s2384_s18 = scalar_select %p2048_p7, 1, 0 }
  0x42   : > { %s2057_s22 = sshll.u32 %s1888_s11, 7  ;;  %p2059_p13 = pnand %p1537_p12, %p49_p8 }
  0x43   : > { %s309_s24 = sand.u32 1, %s1888_s11   ;;  %s2386_s2 = sld [smem:[#allocation27_spill]] }
  0x44   : > { %s313_s29 = scalar_lea.vmem [#allocation7], %s2054_s21  ;;  %s1895_s19 = smov [#allocation12]  }
  0x45   : > { %s320_s15 = sshll.u32 %s313_s29, 4  ;;  %s251_s20 = sshll.u32 %s1895_s19, 4  ;;  %s2071_s15 = int_to_ptr.vmem [resolvable:$true] %s320_s15  ;;  %s252_s20 = int_to_ptr.vmem [resolvable:$true] %s251_s20 }
  0x46   : > { %s2073_s4 = scalar_lea.sflag [#allocation8], %s309_s24  ;;  %p2079_p2 = pneg %p2059_p13 }
  0x48   : > { %s2387_s0 = scalar_select %p2079_p2, 1, 0 }
  0x49   : > { %s2068_s28 = scalar_lea.hbm %s2386_s2, %s2057_s22  ;;  %s1679_s29 = scalar_lea.hbm %s2386_s2, 256 }
  0x4a   : > { %s1674_s6 = scalar_lea.hbm %s2068_s28, 128  ;;  %p1680_p10 = scmp.lt.s32.totalorder %s2068_s28, %s2386_s2 }
  0x4b   : > { %p1675_p0 = scmp.ne.s32.totalorder %s2068_s28, %s1674_s6  ;;  %p1681_p11 = scmp.lt.s32.totalorder %s1679_s29, %s1674_s6 }
  0x4d   : > { %p1677_p5 = pnand %p2079_p2, %p1675_p0  ;;  %p1682_p12 = por %p1681_p11, %p1680_p10 }
  0x4f   : > { %p1678_p8 = pneg %p1677_p5 }
  0x51   : > { %p1683_p1 = pnand %p1682_p12, %p1678_p8 }
  0x53   : > { %1686 = shalt.err (!%p1683_p1)
}
  0x54   : > { %s1687_s19 = scalar_lea.vmem %s2071_s15, 128  ;;  %s1896_s24 = smov [#allocation7]  }
  0x55   : > { %p1688_p7 = scmp.ne.s32.totalorder %s2071_s15, %s1687_s19  ;;  %s1692_s25 = sshll.u32 %s1896_s24, 4  ;;  %s1693_s25 = int_to_ptr.vmem [resolvable:$false] %s1692_s25 }
  0x56   : > { %s1694_s26 = scalar_lea.vmem %s1693_s25, 256  ;;  %p1695_p4 = scmp.lt.s32.totalorder %s2071_s15, %s1693_s25 }
  0x57   : > { %p1690_p0 = pnand %p1688_p7, %p2079_p2  ;;  %p1696_p9 = scmp.lt.s32.totalorder %s1694_s26, %s1687_s19 }
  0x59   : > { %p1691_p5 = pneg %p1690_p0  ;;  %p1697_p3 = por %p1696_p9, %p1695_p4 }
  0x5b   : > { %p1698_p6 = pnand %p1697_p3, %p1691_p5 }
  0x5d   : > { %1701 = shalt.err (!%p1698_p6)
}
  0x5e   : > { %1525 = dma.hbm_to_vmem [thread:$0]  (!%p2059_p13), %s2068_s28, 128, %s2071_s15, %s2073_s4  }
  0x5f   : > { %s1713_s6 = scalar_lea.vmem %s252_s20, 256  ;;  %p2388_p7 = scmp.ne.s32.totalorder %s2377_s17, 0 }
  0x60   : > { %p1714_p1 = scmp.ne.s32.totalorder %s252_s20, %s1713_s6  ;;  %p1721_p12 = scmp.lt.s32.totalorder %s252_s20, %s252_s20 }
  0x61   : > { %p2389_p8 = pneg %p2388_p7  ;;  %p1722_p0 = scmp.lt.s32.totalorder %s1713_s6, %s1713_s6 }
  0x63   : > { %p1716_p10 = pnand %p1714_p1, %p2389_p8  ;;  %p1723_p2 = por %p1722_p0, %p1721_p12 }
  0x65   : > { %p1717_p11 = pneg %p1716_p10 }
  0x67   : > { %p1724_p4 = pnand %p1723_p2, %p1717_p11 }
  0x69   : > { %1727 = shalt.err (!%p1724_p4)
}
  0x6a   : > { %s2390_s11 = smov 4   ;;  %s2391_s27 = smov 64  }
  0x6b   : > { %1512 = dma.hbm_to_vmem [thread:$0]  (!%p2388_p7), %s2350_s5, 256, %s252_s20, [#allocation11], %s2391_s27, %s2391_s27, %s2390_s11  }
  0x6c   : > { %s1897_s15 = smov [#allocation15]   ;;  %p2392_p6 = pmov %p2389_p8 }
  0x6d   : > { %s277_s28 = sshll.u32 %s1897_s15, 4  ;;  %s278_s28 = int_to_ptr.vmem [resolvable:$true] %s277_s28 }
  0x6e   : > { %s1739_s24 = scalar_lea.vmem %s278_s28, 256  ;;  %p1747_p5 = scmp.lt.s32.totalorder %s278_s28, %s278_s28 }
  0x6f   : > { %p1740_p3 = scmp.ne.s32.totalorder %s278_s28, %s1739_s24  ;;  %p1748_p1 = scmp.lt.s32.totalorder %s1739_s24, %s1739_s24 }
  0x71   : > { %p1742_p9 = pnand %p1740_p3, %p2392_p6  ;;  %p1749_p8 = por %p1748_p1, %p1747_p5 }
  0x73   : > { %p1743_p2 = pneg %p1742_p9 }
  0x75   : > { %p1750_p10 = pnand %p1749_p8, %p1743_p2 }
  0x77   : > { %1753 = shalt.err (!%p1750_p10)
}
  0x78   : > { %1518 = dma.hbm_to_vmem [thread:$0]  (!%p2388_p7), %s2352_s7, 256, %s278_s28, [#allocation14], %s2391_s27, %s2391_s27, %s2390_s11  }
  0x79   : > { %s2393_s1 = sld [smem:[#allocation26_spill]]  ;;  %s295_s17 = scalar_lea.vmem [#allocation4], %s2054_s21 }
  0x7a   : > { %s302_s19 = sshll.u32 %s295_s17, 4  ;;  %s2394_s15 = sand.u32 1, %s1884_s10   ;;  %s303_s19 = int_to_ptr.vmem [resolvable:$true] %s302_s19 }
  0x7b   : > { %s292_s24 = scalar_lea.sflag [#allocation5], %s2394_s15  ;;  %p2395_p12 = scmp.ne.s32.totalorder %s2387_s0, 0 }
  0x7f   : > { %s2128_s29 = scalar_lea.hbm %s2393_s1, %s2057_s22  ;;  %s1759_s27 = scalar_lea.hbm %s2393_s1, 256 }
  0x80   : > { %s1754_s2 = scalar_lea.hbm %s2128_s29, 128  ;;  %p1760_p7 = scmp.lt.s32.totalorder %s2128_s29, %s2393_s1 }
  0x81   : > { %p1755_p11 = scmp.ne.s32.totalorder %s2128_s29, %s1754_s2  ;;  %p1761_p3 = scmp.lt.s32.totalorder %s1759_s27, %s1754_s2 }
  0x83   : > { %p1757_p0 = pnand %p1755_p11, %p2395_p12  ;;  %p1762_p6 = por %p1761_p3, %p1760_p7 }
  0x85   : > { %p1758_p4 = pneg %p1757_p0 }
  0x87   : > { %p1763_p9 = pnand %p1762_p6, %p1758_p4 }
  0x89   : > { %1766 = shalt.err (!%p1763_p9)
}
  0x8a   : > { %s1767_s26 = scalar_lea.vmem %s303_s19, 128  ;;  %s1898_s6 = smov [#allocation4]  }
  0x8b   : > { %p1768_p2 = scmp.ne.s32.totalorder %s303_s19, %s1767_s26  ;;  %s1772_s17 = sshll.u32 %s1898_s6, 4  ;;  %s1773_s17 = int_to_ptr.vmem [resolvable:$false] %s1772_s17 }
  0x8c   : > { %s1774_s15 = scalar_lea.vmem %s1773_s17, 256  ;;  %p1775_p8 = scmp.lt.s32.totalorder %s303_s19, %s1773_s17 }
  0x8d   : > { %p1770_p5 = pnand %p1768_p2, %p2395_p12  ;;  %p1776_p10 = scmp.lt.s32.totalorder %s1774_s15, %s1767_s26 }
  0x8f   : > { %p1771_p1 = pneg %p1770_p5  ;;  %p1777_p11 = por %p1776_p10, %p1775_p8 }
  0x91   : > { %p1778_p0 = pnand %p1777_p11, %p1771_p1 }
  0x93   : > { %1781 = shalt.err (!%p1778_p0)
}
  0x94   : > { %1522 = dma.hbm_to_vmem [thread:$0]  (!%p2059_p13), %s2128_s29, 128, %s303_s19, %s292_s24  }
  0x95   : > { %s336_s11 = scalar_lea.hbm %s2348_s3, %s2057_s22  ;;  %s331_s27 = scalar_lea.vmem [#allocation9], %s2054_s21 }
  0x96   : > { %s338_s28 = sshll.u32 %s331_s27, 4  ;;  %s1782_s25 = scalar_lea.hbm %s336_s11, 128  ;;  %s339_s28 = int_to_ptr.vmem [resolvable:$true] %s338_s28 }
  0x97   : > { %p1783_p4 = scmp.ne.s32.totalorder %s336_s11, %s1782_s25  ;;  %s1787_s17 = scalar_lea.hbm %s2348_s3, 256 }
  0x98   : > { %p1788_p6 = scmp.lt.s32.totalorder %s336_s11, %s2348_s3  ;;  %p1789_p9 = scmp.lt.s32.totalorder %s1787_s17, %s1782_s25 }
  0x99   : > { %p1785_p7 = pnand %p1783_p4, %p2395_p12 }
  0x9a   : > { %p1790_p2 = por %p1789_p9, %p1788_p6 }
  0x9b   : > { %p1786_p3 = pneg %p1785_p7 }
  0x9d   : > { %p1791_p5 = pnand %p1790_p2, %p1786_p3 }
  0x9f   : > { %1794 = shalt.err (!%p1791_p5)
}
  0xa0   : > { %s1795_s21 = scalar_lea.vmem %s339_s28, 128  ;;  %s1899_s22 = smov [#allocation9]  }
  0xa1   : > { %p1796_p1 = scmp.ne.s32.totalorder %s339_s28, %s1795_s21  ;;  %s1800_s29 = sshll.u32 %s1899_s22, 4  ;;  %s1801_s29 = int_to_ptr.vmem [resolvable:$false] %s1800_s29 }
  0xa2   : > { %s1802_s19 = scalar_lea.vmem %s1801_s29, 256  ;;  %p1803_p11 = scmp.lt.s32.totalorder %s339_s28, %s1801_s29 }
  0xa3   : > { %p1798_p8 = pnand %p1796_p1, %p2395_p12  ;;  %p1804_p0 = scmp.lt.s32.totalorder %s1802_s19, %s1795_s21 }
  0xa5   : > { %p1799_p10 = pneg %p1798_p8  ;;  %p1805_p4 = por %p1804_p0, %p1803_p11 }
  0xa7   : > { %p1806_p7 = pnand %p1805_p4, %p1799_p10 }
  0xa9   : > { %1809 = shalt.err (!%p1806_p7)
}
  0xaa   : > { %1528 = dma.hbm_to_vmem [thread:$0]  (!%p2059_p13), %s336_s11, 128, %s339_s28, %s2073_s4  }
  0xab   : > { %p2396_p3 = scmp.ne.s32.totalorder %s2376_s14, 0 }
  0xac   : > { %s2170_s1 = sand.u32 (!%p2396_p3), 1, %s1880_s9   ;;  %p2397_p12 = scmp.ne.s32.totalorder (!%p2396_p3), %s2382_s12, 0 }
  0xad   : > { %347 = sbr.rel (%p2396_p3) target bundleno = 1553 (0x611), region = 48  ;;  %s2173_s0 = sshll.u32 (!%p2396_p3), %s2170_s1, 3 }
  0xae   : > { %s350_s24 = scalar_lea.sflag (!%p2396_p3), [#allocation5], %s2170_s1  ;;  %s353_s2 = scalar_lea.vmem (!%p2396_p3), [#allocation4], %s2173_s0 }
  0xb2   : > { %1855 = dma.done.wait (%p2397_p12), %s350_s24, 128  }
  0xb3   : > { %1857 = vsyncadd (%p2397_p12), %s350_s24, 4294967168  ;;  %s358_s4 = sand.u32 1, %s1978_s13   ;;  %s362_s23 = scalar_lea.vmem [#allocation7], %s2173_s0 }
  0xb4   : > { %s359_s14 = scalar_lea.sflag [#allocation8], %s358_s4 }
  0xb5   : > { %1859 = dma.done.wait (%p2397_p12), %s359_s14, 256  }
  0xb6   : > { %1861 = vsyncadd (%p2397_p12), %s359_s14, 4294967040  ;;  %s371_s20 = scalar_lea.vmem [#allocation9], %s2173_s0  ;;  %p2398_p13 = scmp.eq.s32.totalorder %s1978_s13, 0 }
  0xb8   : > { %1863 = dma.done.wait (%p2398_p13), [#allocation11], 512   ;;  %p2399_p6 = pmov %p2398_p13 }
  0xba   : > { %1865 = vsyncadd (%p2399_p6), [#allocation11], 4294966784  ;;  %p2400_p9 = pmov %p2399_p6 }
  0xbb   : > { %p2401_p2 = pmov %p2399_p6 }
  0xbc   : > { %1867 = dma.done.wait (%p2400_p9), [#allocation14], 512  }
  0xbd   : > { %1869 = vsyncadd (%p2401_p2), [#allocation14], 4294966784  ;;  %v1900_v0 = vmov 0.0   ;;  %vm1901_vm0 = vmmov 0   ;;  %v1590_v1 = vld [vmem:[#allocation10 + $0x8] sm:$0xff]   ;;  %v1591_v2 = vld [vmem:[#allocation12 + $0x8] sm:$0xff]   ;;  %v841_v46 = vlaneseq }
  0xbe   : > { %1402 = vmatprep.subr.bf16.mxu0 %v1900_v0  ;;  %1410 = vmatprep.subr.bf16.mxu1 %v1900_v0  ;;  %v1592_v3 = vld [vmem:[#allocation10] sm:$0xff]   ;;  %v1593_v4 = vld [vmem:[#allocation12] sm:$0xff]   ;;  %vm451_vm1 = vcmask 261120   ;;  %v1594_v9 = vld [vmem:[#allocation13 + $0x8] sm:$0xff]   ;;  %vm656_vm2 = vcmask 64512   ;;  %s1902_s12 = smov 120  }
  0xbf   : > { %1406 = vmatprep.mubr.msk.bf16.mxu0 %vm1901_vm0, %v1900_v0  ;;  %1414 = vmatprep.mubr.msk.bf16.mxu1 %vm1901_vm0, %v1900_v0  ;;  %v429_v5 = vld [vmem:[%s353_s2] sm:$0xff]  ;;  %v431_v6 = vld [vmem:[%s362_s23] sm:$0xff]  ;;  %s1903_s11 = smov 112   ;;  %s1904_s27 = smov 104   ;;  %vm903_vm3 = vcmask 1043456   ;;  %v842_v47 = vand.u32 127, %v841_v46 }
  0xc0   : > { %1403 = vmatpush3.bf16.msra.mxu0 %v1590_v1  ;;  %1411 = vmatpush3.bf16.msra.mxu1 %v1591_v2  ;;  %v430_v7 = vpack.c.bf16 %v429_v5, %v429_v5  ;;  %v432_v8 = vpack.c.bf16 %v431_v6, %v431_v6  ;;  %v1595_v10 = vld [vmem:[#allocation13] sm:$0xff]   ;;  %v433_v11 = vld [vmem:[%s371_s20] sm:$0xff]  ;;  %s843_s28 = sld [smem:[#allocation3 + %s1978_s13]]  ;;  %s1905_s25 = smov 8   ;;  %vm1098_vm5 = vcmask 130048   ;;  %vm1100_vm6 = vcmask 195584  }
  0xc1   : > { %1404 = vmatprep.subr.bf16.mxu0 %v1900_v0  ;;  %1412 = vmatprep.subr.bf16.mxu1 %v1900_v0  ;;  %v434_v12 = vpack.c.bf16 %v433_v11, %v433_v11  ;;  %s1906_s26 = smov 16   ;;  %s1907_s6 = smov 24  }
  0xc2   : > { %s1371_s17 = sshll.u32 %s1978_s13, 7  ;;  %s427_s15 = scalar_lea.vmem [#allocation16], %s2173_s0 }
  0xc3   : > { %s1177_s21 = sshll.u32 %s427_s15, 4  ;;  %s2301_s19 = scalar_lea.hbm %s2353_s8, %s1371_s17  ;;  %s2303_s21 = int_to_ptr.vmem [resolvable:$true] %s1177_s21 }
  0xc4   : > { %1405 = vmatpush3.bf16.msra.mxu0 %v1592_v3  ;;  %1413 = vmatpush3.bf16.msra.mxu1 %v1593_v4  ;;  %s1164_s24 = scalar_lea.sflag [#allocation6], %s2170_s1  ;;  %s1810_s2 = scalar_lea.vmem %s2303_s21, 128 }
  0xc5   : > { %1418 = vmatprep.subr.bf16.mxu0 %v1900_v0  ;;  %1426 = vmatprep.subr.bf16.mxu1 %v1900_v0  ;;  %p1811_p5 = scmp.ne.s32.totalorder %s2303_s21, %s1810_s2  ;;  %p2404_p1 = scmp.ne.s32.totalorder %s2383_s16, 0 }
  0xc6   : > { %v844_v48 = vstv %s843_s28  ;;  %s1908_s13 = smov [#allocation16]  }
  0xc7   : > { %1407 = vmatmul.mubr.msk.bf16.vlgmr.msra.gmra.mxu0 %vm451_vm1, %v430_v7  ;;  %1415 = vmatmul.mubr.msk.bf16.vlgmr.msra.gmra.mxu1 %vm451_vm1, %v432_v8  ;;  %vm2252_vm4 = vcmp.lt.s32.totalorder %v842_v47, %v844_v48  ;;  %p1812_p8 = pnand %p1811_p5, %p2404_p1  ;;  %s1814_s0 = sshll.u32 %s1908_s13, 4  ;;  %s1815_s0 = int_to_ptr.vmem [resolvable:$false] %s1814_s0 }
  0xc8   : > { %1422 = vmatprep.mubr.msk.bf16.mxu0 %vm1901_vm0, %v1900_v0  ;;  %1428 = vmatprep.mubr.msk.bf16.mxu1 %vm1901_vm0, %v1900_v0  ;;  %s1816_s4 = scalar_lea.vmem %s1815_s0, 256  ;;  %p1817_p11 = scmp.lt.s32.totalorder %s2303_s21, %s1815_s0 }
  0xc9   : > { %1419 = vmatpush3.bf16.msra.mxu0 %v1594_v9  ;;  %p1813_p10 = pneg %p1812_p8  ;;  %p1818_p0 = scmp.lt.s32.totalorder %s1816_s4, %s1810_s2 }
  0xca   : > { %1420 = vmatprep.subr.bf16.mxu0 %v1900_v0 }
  0xcb   : > { %p1819_p4 = por %p1818_p0, %p1817_p11 }
  0xcd   : > { %1421 = vmatpush3.bf16.msra.mxu0 %v1595_v10  ;;  %p1820_p7 = pnand %p1819_p4, %p1813_p10 }
  0xce   : > { %1432 = vmatprep.subr.bf16.mxu0 %v1900_v0 }
  0xd0   : > { %1423 = vmatmul.mubr.msk.bf16.vlgmr.msra.gmra.mxu0 %vm451_vm1, %v434_v12 }
  0xd1   : > { %1434 = vmatprep.mubr.msk.bf16.mxu0 %vm1901_vm0, %v1900_v0 }
 0x187   : > { %v489_v13 = vpop.f32.mrf.mxu0  ;;  %v548_v15 = vpop.f32.mrf.mxu1 }
 0x188   : > { %v613_v14 = vmul.f32 0.35355338, %v489_v13  ;;  %629 = vrot.lane.b32.xlu0 %v548_v15, %s1902_s12  ;;  %v638_v17 = vpack.c.bf16 %v548_v15, %v548_v15 }
 0x189   : > { %v1408_v16 = vpop.f32.mrf.mxu0  ;;  %v1416_v18 = vpop.f32.mrf.mxu1 }
 0x18a   : > { %615 = vrot.lane.b32.xlu1 %v613_v14, %s1902_s12  ;;  %v661_v20 = vsel %vm656_vm2, %v638_v17, 0  ;;  %v624_v24 = vpack.c.bf16 %v613_v14, %v613_v14 }
 0x18b   : > { %v492_v19 = vpop.f32.mrf.mxu0  ;;  %v551_v21 = vpop.f32.mrf.mxu1  ;;  %1427 = vmatpush3.bf16.xpose.msra.mxu1 %v661_v20 }
 0x18c   : > { %632 = vrot.lane.b32.xlu0 %v548_v15, %s1903_s11  ;;  %1438 = vmatprep.subr.bf16.mxu1 %v1900_v0 }
 0x18d   : > { %v1409_v22 = vpop.f32.mrf.mxu0  ;;  %v1417_v23 = vpop.f32.mrf.mxu1 }
 0x18e   : > { %635 = vrot.lane.b32.xlu1 %v548_v15, %s1904_s27 }
 0x190   : > { %618 = vrot.lane.b32.xlu0 %v613_v14, %s1903_s11  ;;  %v2230_v25 = vpop.f32.mrf.mxu0 }
 0x191   : > { %v652_v39 = vpack.c.bf16 %v2230_v25, %v2230_v25 }
 0x192   : > { %621 = vrot.lane.b32.xlu1 %v613_v14, %s1904_s27  ;;  %1429 = vmatmul.mubr.msk.bf16.vlgmr.msra.gmra.mxu1 %vm656_vm2, %v624_v24  ;;  %v1424_v26 = vpop.f32.mrf.mxu0 }
 0x193   : > { %1440 = vmatprep.mubr.msk.bf16.mxu1 %vm1901_vm0, %v1900_v0  ;;  %v905_v43 = vsel %vm903_vm3, %v652_v39, 0 }
 0x194   : > { %v610_v27 = vpop.f32.mrf.mxu0 }
 0x196   : > { %v1425_v28 = vpop.f32.mrf.mxu0 }
 0x1fa   : > { %v630_v29 = vpop.permute.xlu0 %629 }
 0x1fb   : > { %v639_v30 = vpack.c.bf16 %v630_v29, %v630_v29 }
 0x1fc   : > { %v616_v31 = vpop.permute.xlu1 %615 }
 0x1fd   : > { %v707_v32 = vsel %vm656_vm2, %v639_v30, 0  ;;  %v625_v38 = vpack.c.bf16 %v616_v31, %v616_v31 }
 0x1fe   : > { %v633_v33 = vpop.permute.xlu0 %632  ;;  %1433 = vmatpush3.bf16.xpose.msra.mxu0 %v707_v32 }
 0x1ff   : > { %v640_v34 = vpack.c.bf16 %v633_v33, %v633_v33  ;;  %1444 = vmatprep.subr.bf16.mxu0 %v1900_v0 }
 0x200   : > { %v636_v35 = vpop.permute.xlu1 %635 }
 0x201   : > { %v753_v36 = vsel %vm656_vm2, %v640_v34, 0  ;;  %v641_v37 = vpack.c.bf16 %v636_v35, %v636_v35 }
 0x202   : > { %1439 = vmatpush3.bf16.xpose.msra.mxu1 %v753_v36  ;;  %v619_v40 = vpop.permute.xlu0 %618 }
 0x203   : > { %1450 = vmatprep.subr.bf16.mxu1 %v1900_v0  ;;  %v799_v41 = vsel %vm656_vm2, %v641_v37, 0  ;;  %v626_v42 = vpack.c.bf16 %v619_v40, %v619_v40 }
 0x204   : > { %v622_v44 = vpop.permute.xlu1 %621 }
 0x205   : > { %1435 = vmatmul.mubr.msk.bf16.vlgmr.msra.gmra.mxu0 %vm656_vm2, %v625_v38  ;;  %v627_v45 = vpack.c.bf16 %v622_v44, %v622_v44 }
 0x206   : > { %1445 = vmatpush3.bf16.xpose.msra.mxu0 %v799_v41  ;;  %1446 = vmatprep.mubr.msk.bf16.mxu0 %vm1901_vm0, %v1900_v0 }
 0x207   : > { %1456 = vmatprep.subr.bf16.mxu0 %v1900_v0 }
 0x209   : > { %1441 = vmatmul.mubr.msk.bf16.vlgmr.msra.gmra.mxu1 %vm656_vm2, %v626_v42 }
 0x20a   : > { %1451 = vmatpush3.bf16.msra.mxu1 %v905_v43  ;;  %1452 = vmatprep.mubr.msk.bf16.mxu1 %vm1901_vm0, %v1900_v0 }
 0x20b   : > { %1462 = vmatprep.subr.bf16.mxu1 %v1900_v0 }
 0x20d   : > { %1447 = vmatmul.mubr.msk.bf16.vlgmr.msra.gmra.mxu0 %vm656_vm2, %v627_v45 }
 0x20e   : > { %1458 = vmatprep.mubr.msk.bf16.mxu0 %vm1901_vm0, %v1900_v0 }
 0x252   : > { %v697_v50 = vpop.f32.mrf.mxu1 }
 0x253   : > { %v848_v51 = vsel %vm2252_vm4, %v697_v50, -1000000.0 }
 0x254   : > { %v1430_v52 = vpop.f32.mrf.mxu1  ;;  %v852_v53 = vsel %vm656_vm2, %v848_v51, -inf }
 0x255   : > { %853 = vmax.xlane.f32.xlu0 %v852_v53 }
 0x256   : > { %v700_v54 = vpop.f32.mrf.mxu1 }
 0x258   : > { %v1431_v55 = vpop.f32.mrf.mxu1 }
 0x2c5   : > { %v743_v56 = vpop.f32.mrf.mxu0 }
 0x2c6   : > { %v849_v57 = vsel %vm2252_vm4, %v743_v56, -1000000.0 }
 0x2c7   : > { %v1436_v58 = vpop.f32.mrf.mxu0  ;;  %v855_v59 = vsel %vm656_vm2, %v849_v57, -inf }
 0x2c8   : > { %856 = vmax.xlane.f32.xlu1 %v855_v59 }
 0x2c9   : > { %v746_v60 = vpop.f32.mrf.mxu0  ;;  %v789_v61 = vpop.f32.mrf.mxu1 }
 0x2ca   : > { %v850_v62 = vsel %vm2252_vm4, %v789_v61, -1000000.0  ;;  %v1596_v60 = vld [vmem:[#allocation15 + $0x8] sm:$0xff]   ;;  %v1597_v61 = vld [vmem:[#allocation15] sm:$0xff]  }
 0x2cb   : > { %v1437_v63 = vpop.f32.mrf.mxu0  ;;  %v1442_v1 = vpop.f32.mrf.mxu1  ;;  %v858_v2 = vsel %vm656_vm2, %v850_v62, -inf }
 0x2cc   : > { %859 = vmax.xlane.f32.xlu0 %v858_v2 }
 0x2cd   : > { %v792_v3 = vpop.f32.mrf.mxu1  ;;  %v835_v4 = vpop.f32.mrf.mxu0 }
 0x2ce   : > { %v851_v5 = vsel %vm2252_vm4, %v835_v4, -1000000.0 }
 0x2cf   : > { %v1443_v6 = vpop.f32.mrf.mxu1  ;;  %v1448_v7 = vpop.f32.mrf.mxu0  ;;  %v861_v8 = vsel %vm656_vm2, %v851_v5, -inf }
 0x2d0   : > { %862 = vmax.xlane.f32.xlu0 %v861_v8 }
 0x2d1   : > { %v838_v9 = vpop.f32.mrf.mxu0 }
 0x2d3   : > { %v1449_v10 = vpop.f32.mrf.mxu0 }
 0x2d9   : > { %643 = vrot.lane.b32.xlu1 %v2230_v25, %s1902_s12 }
 0x2de   : > { %v854_v11 = vpop.xlane.xlu0 %853 }
 0x2df   : > { %v864_v12 = vsub.f32 %v848_v51, %v854_v11 }
 0x2e1   : > { %v868_v13 = vmul.f32 1.442695, %v864_v12 }
 0x2e3   : > { %1598 = vpow2.f32 %v868_v13 }
 0x2f0   : > { %v1599_v14 = vpop.eup %1598 }
 0x2f1   : > { %v876_v15 = vsel %vm656_vm2, %v1599_v14, 0.0 }
 0x2fd   : > { %877 = vadd.xlane.f32.xlu1 %v876_v15 }
 0x351   : > { %v857_v16 = vpop.xlane.xlu1 %856 }
 0x352   : > { %v865_v17 = vsub.f32 %v849_v57, %v857_v16 }
 0x354   : > { %v870_v18 = vmul.f32 1.442695, %v865_v17 }
 0x355   : > { %v860_v19 = vpop.xlane.xlu0 %859  ;;  %v644_v20 = vpop.permute.xlu1 %643 }
 0x356   : > { %1600 = vpow2.f32 %v870_v18  ;;  %v866_v21 = vsub.f32 %v850_v62, %v860_v19  ;;  %v653_v22 = vpack.c.bf16 %v644_v20, %v644_v20 }
 0x358   : > { %v872_v23 = vmul.f32 1.442695, %v866_v21  ;;  %v951_v24 = vsel %vm903_vm3, %v653_v22, 0 }
 0x359   : > { %1457 = vmatpush3.bf16.msra.mxu0 %v951_v24  ;;  %v863_v26 = vpop.xlane.xlu0 %862 }
 0x35a   : > { %1602 = vpow2.f32 %v872_v23  ;;  %v867_v27 = vsub.f32 %v851_v5, %v863_v26  ;;  %1468 = vmatprep.subr.bf16.mxu0 %v1900_v0 }
 0x35c   : > { %v874_v28 = vmul.f32 1.442695, %v867_v27 }
 0x35e   : > { %1604 = vpow2.f32 %v874_v28 }
 0x363   : > { %v1601_v29 = vpop.eup %1600 }
 0x364   : > { %v879_v30 = vsel %vm656_vm2, %v1601_v29, 0.0 }
 0x365   : > { %880 = vadd.xlane.f32.xlu0 %v879_v30 }
 0x367   : > { %v1603_v31 = vpop.eup %1602 }
 0x368   : > { %v882_v32 = vsel %vm656_vm2, %v1603_v31, 0.0 }
 0x369   : > { %883 = vadd.xlane.f32.xlu1 %v882_v32 }
 0x36b   : > { %v1605_v33 = vpop.eup %1604 }
 0x36c   : > { %v885_v34 = vsel %vm656_vm2, %v1605_v33, 0.0 }
 0x36d   : > { %886 = vadd.xlane.f32.xlu0 %v885_v34 }
 0x37a   : > { %649 = vrot.lane.b32.xlu1 %v2230_v25, %s1904_s27 }
 0x383   : > { %646 = vrot.lane.b32.xlu0 %v2230_v25, %s1903_s11 }
 0x386   : > { %v878_v35 = vpop.xlane.xlu1 %877 }
 0x387   : > { %1606 = vrcp.f32 %v878_v35 }
 0x394   : > { %v1607_v36 = vpop.eup %1606 }
 0x395   : > { %v892_v37 = vmul.f32 %v1607_v36, %v1599_v14 }
 0x397   : > { %v896_v38 = vpack.c.bf16 %v892_v37, %v892_v37 }
 0x399   : > { %1453 = vmatmul.mubr.msk.bf16.vlgmr.msra.gmra.mxu1 %vm656_vm2, %v896_v38 }
 0x39a   : > { %1464 = vmatprep.mubr.msk.bf16.mxu1 %vm1901_vm0, %v1900_v0 }
 0x3ee   : > { %v881_v39 = vpop.xlane.xlu0 %880 }
 0x3ef   : > { %1608 = vrcp.f32 %v881_v39 }
 0x3f2   : > { %v884_v40 = vpop.xlane.xlu1 %883 }
 0x3f3   : > { %1610 = vrcp.f32 %v884_v40 }
 0x3f6   : > { %v887_v41 = vpop.xlane.xlu0 %886  ;;  %v650_v42 = vpop.permute.xlu1 %649 }
 0x3f7   : > { %1612 = vrcp.f32 %v887_v41  ;;  %v655_v45 = vpack.c.bf16 %v650_v42, %v650_v42 }
 0x3f9   : > { %v1043_v50 = vsel %vm903_vm3, %v655_v45, 0 }
 0x3fa   : > { %v647_v43 = vpop.permute.xlu0 %646 }
 0x3fb   : > { %v654_v44 = vpack.c.bf16 %v647_v43, %v647_v43 }
 0x3fc   : > { %v1609_v25 = vpop.eup %1608 }
 0x3fd   : > { %v997_v46 = vsel %vm903_vm3, %v654_v44, 0  ;;  %v893_v47 = vmul.f32 %v1609_v25, %v1601_v29 }
 0x3fe   : > { %1463 = vmatpush3.bf16.msra.mxu1 %v997_v46 }
 0x3ff   : > { %v897_v48 = vpack.c.bf16 %v893_v47, %v893_v47  ;;  %1474 = vmatprep.subr.bf16.mxu1 %v1900_v0 }
 0x400   : > { %v1611_v49 = vpop.eup %1610 }
 0x401   : > { %1459 = vmatmul.mubr.msk.bf16.vlgmr.msra.gmra.mxu0 %vm656_vm2, %v897_v48  ;;  %v894_v51 = vmul.f32 %v1611_v49, %v1603_v31 }
 0x402   : > { %1469 = vmatpush3.bf16.msra.mxu0 %v1043_v50  ;;  %1470 = vmatprep.mubr.msk.bf16.mxu0 %vm1901_vm0, %v1900_v0 }
 0x403   : > { %v898_v52 = vpack.c.bf16 %v894_v51, %v894_v51 }
 0x404   : > { %v1613_v53 = vpop.eup %1612 }
 0x405   : > { %1465 = vmatmul.mubr.msk.bf16.vlgmr.msra.gmra.mxu1 %vm656_vm2, %v898_v52  ;;  %v895_v54 = vmul.f32 %v1613_v53, %v1605_v33 }
 0x406   : > { %1478 = vmatprep.mubr.msk.bf16.mxu1 %vm1901_vm0, %v1900_v0  ;;  %1475 = vmatpush3.bf16.msra.mxu1 %v1596_v60 }
 0x407   : > { %v899_v55 = vpack.c.bf16 %v895_v54, %v895_v54  ;;  %1476 = vmatprep.subr.bf16.mxu1 %v1900_v0 }
 0x409   : > { %1471 = vmatmul.mubr.msk.bf16.vlgmr.msra.gmra.mxu0 %vm656_vm2, %v899_v55 }
 0x40a   : > { %1477 = vmatpush3.bf16.msra.mxu1 %v1597_v61 }
 0x459   : > { %v941_v56 = vpop.f32.mrf.mxu1 }
 0x45b   : > { %v1454_v57 = vpop.f32.mrf.mxu1 }
 0x45d   : > { %v944_v58 = vpop.f32.mrf.mxu1 }
 0x45f   : > { %v1455_v59 = vpop.f32.mrf.mxu1 }
 0x4c1   : > { %v987_v62 = vpop.f32.mrf.mxu0 }
 0x4c2   : > { %1086 = vrot.lane.b32.xlu1 %v987_v62, %s1905_s25 }
 0x4c3   : > { %v1460_v63 = vpop.f32.mrf.mxu0 }
 0x4c5   : > { %v990_v1 = vpop.f32.mrf.mxu0  ;;  %v1033_v2 = vpop.f32.mrf.mxu1 }
 0x4c6   : > { %1090 = vrot.lane.b32.xlu0 %v1033_v2, %s1906_s26 }
 0x4c7   : > { %v1461_v3 = vpop.f32.mrf.mxu0  ;;  %v1466_v4 = vpop.f32.mrf.mxu1 }
 0x4c9   : > { %v1036_v5 = vpop.f32.mrf.mxu1  ;;  %v1079_v6 = vpop.f32.mrf.mxu0 }
 0x4ca   : > { %1094 = vrot.lane.b32.xlu1 %v1079_v6, %s1907_s6 }
 0x4cb   : > { %v1467_v7 = vpop.f32.mrf.mxu1  ;;  %v1472_v0 = vpop.f32.mrf.mxu0 }
 0x4cd   : > { %v1082_v8 = vpop.f32.mrf.mxu0 }
 0x4cf   : > { %v1473_v9 = vpop.f32.mrf.mxu0 }
 0x534   : > { %v1087_v10 = vpop.permute.xlu1 %1086 }
 0x535   : > { %v1097_v12 = vsel %vm656_vm2, %v941_v56, %v1087_v10 }
 0x538   : > { %v1091_v11 = vpop.permute.xlu0 %1090 }
 0x539   : > { %v1099_v13 = vsel %vm1098_vm5, %v1097_v12, %v1091_v11 }
 0x53c   : > { %v1095_v14 = vpop.permute.xlu1 %1094 }
 0x53d   : > { %v1101_v15 = vsel %vm1100_vm6, %v1099_v13, %v1095_v14 }
 0x53e   : > { %v1102_v16 = vpack.c.bf16 %v1101_v15, %v1101_v15 }
 0x540   : > { %1479 = vmatmul.mubr.msk.bf16.vlgmr.msra.gmra.mxu1 %vm451_vm1, %v1102_v16 }
 0x600   : > { %v1156_v17 = vpop.f32.mrf.mxu1 }
 0x601   : > { %1162 = vst.msk [vmem:[%s427_s15] sm:$0xff] %vm451_vm1, %v1156_v17 }
 0x602   : > { %v1480_v18 = vpop.f32.mrf.mxu1 }
 0x603   : > { %1823 = shalt.err (!%p1820_p7)
}
 0x604   : > { %s1824_s14 = scalar_lea.hbm %s2301_s19, 128  ;;  %s1828_s20 = scalar_lea.hbm %s2353_s8, 256 }
 0x605   : > { %p1825_p3 = scmp.ne.s32.totalorder %s2301_s19, %s1824_s14  ;;  %p1829_p6 = scmp.lt.s32.totalorder %s2301_s19, %s2353_s8 }
 0x606   : > { %p1830_p9 = scmp.lt.s32.totalorder %s1828_s20, %s1824_s14 }
 0x607   : > { %p1826_p12 = pnand %p1825_p3, %p2404_p1 }
 0x608   : > { %p1831_p2 = por %p1830_p9, %p1829_p6 }
 0x609   : > { %p1827_p13 = pneg %p1826_p12 }
 0x60b   : > { %p1832_p5 = pnand %p1831_p2, %p1827_p13 }
 0x60d   : > { %1835 = shalt.err (!%p1832_p5)
}
 0x60e   : > { %1504 = dma.vmem_to_hbm [thread:$0]  (%p2404_p1), %s2303_s21, 128, %s2301_s19, %s1164_s24   ;;  %v1159_v19 = vpop.f32.mrf.mxu1 }
 0x610   : > { %v1481_v20 = vpop.f32.mrf.mxu1 }
 0x611 PF: > { %s2405_s27 = sld [smem:[#allocation23_spill]]  ;;  %s1189_s28 = sand.u32 1, %s1876_s30  }
 0x612   : > { %p2406_p8 = scmp.ne.s32.totalorder %s2384_s18, 0  ;;  %s1190_s25 = scalar_lea.sflag [#allocation6], %s1189_s28 }
 0x617   : > { %p2407_p10 = scmp.ge.s32.totalorder %s2405_s27, 2 }
 0x619   : > { %p1530_p11 = pnand %p2407_p10, %p2406_p8 }
 0x61b   : > { %p1531_p0 = pneg %p1530_p11 }
 0x61d   : > { %1871 = dma.done.wait (%p1531_p0), %s1190_s25, 128  }
 0x61e   : > { %1873 = vsyncadd (%p1531_p0), %s1190_s25, 4294967168  ;;  %s2408_s11 = sld [smem:[#allocation24_spill]]  ;;  %s2410_s30 = smov %s1880_s9 }
 0x61f   : > { %s2409_s16 = sld [smem:[#allocation25_spill]]  ;;  %s2411_s9 = smov %s1884_s10 }
 0x624   : > { %p30_p1 = scmp.ge.s32.totalorder %s2408_s11, 4  }
 0x625   : > { %s2412_s10 = smov %s2409_s16 }
 0x626   :  { %32 = sbr.rel (!%p30_p1) target bundleno = 18 (0x12), region = 133 }
 0x62b   :  { %1195 = vsyncpa [#allocation5], 1 }
 0x62c   :  { %1197 = vsyncpa [#allocation5 + $0x1], 1 }
 0x62d   :  { %1198 = vsyncpa [#allocation8], 1 }
 0x62e   :  { %1200 = vsyncpa [#allocation8 + $0x1], 1 }
 0x62f   :  { %1201 = vsyncpa [#allocation11], 1 }
 0x630   :  { %1202 = vsyncpa [#allocation14], 1 }
 0x631   :  { %1203 = vsyncpa [#allocation6], 1 }
 0x632   :  { %1205 = vsyncpa [#allocation6 + $0x1], 1 }

</bundles_post_ra>
